<compile_context>
chip_gen: v6e
topology: v6e:2x2x1
jax: 0.10.0
libtpu: 0.0.40
codegen_flags: <defaults>
</compile_context>

<pallas_src>
import functools
import math

import jax
import jax.numpy as jnp
from jax import lax
from jax.experimental import pallas as pl
from jax.experimental.pallas import tpu as pltpu


# --------------------------------------------------------------------------
# Tile-size helper: largest multiple of `align` that divides `dim` and is
# <= desired; otherwise fall back to full extent (always a legal block).
# --------------------------------------------------------------------------
def _pick_tile(dim, desired, align):
    if dim <= desired:
        return dim
    t = (desired // align) * align
    while t >= align:
        if dim % t == 0:
            return t
        t -= align
    return dim


# --------------------------------------------------------------------------
# Tiled linear projection kernel:  out = x @ W + b
# grid = (M//tm, N//tn, K//tk); K is the reduction axis (last, "arbitrary").
# --------------------------------------------------------------------------
def _linear_kernel(x_ref, w_ref, b_ref, o_ref, acc_ref):
    k = pl.program_id(2)

    @pl.when(k == 0)
    def _():
        acc_ref[...] = jnp.zeros_like(acc_ref)

    acc_ref[...] += jnp.dot(x_ref[...], w_ref[...],
                            preferred_element_type=jnp.float32)

    @pl.when(k == pl.num_programs(2) - 1)
    def _():
        o_ref[...] = (acc_ref[...] + b_ref[...].astype(jnp.float32)).astype(o_ref.dtype)


def linear(x2d, w, b, *, tm=256, tn=256, tk=512):
    """x2d: (M, K), w: (K, N), b: (N,) -> (M, N) = x @ w + b."""
    M, K = x2d.shape
    N = w.shape[1]
    tm = _pick_tile(M, tm, 8)     # second-minor dims: multiple of 8 (or full)
    tn = _pick_tile(N, tn, 128)   # minor dims: multiple of 128 (or full)
    tk = _pick_tile(K, tk, 128)
    grid = (M // tm, N // tn, K // tk)
    return pl.pallas_call(
        _linear_kernel,
        out_shape=jax.ShapeDtypeStruct((M, N), x2d.dtype),
        grid_spec=pltpu.PrefetchScalarGridSpec(
            num_scalar_prefetch=0,
            grid=grid,
            in_specs=[
                pl.BlockSpec((tm, tk), lambda i, j, k: (i, k)),
                pl.BlockSpec((tk, tn), lambda i, j, k: (k, j)),
                pl.BlockSpec((1, tn), lambda i, j, k: (0, j)),
            ],
            out_specs=pl.BlockSpec((tm, tn), lambda i, j, k: (i, j)),
            scratch_shapes=[pltpu.VMEM((tm, tn), jnp.float32)],
        ),
        compiler_params=pltpu.CompilerParams(
            dimension_semantics=("parallel", "parallel", "arbitrary"),
            vmem_limit_bytes=32 * 1024 * 1024,
        ),
    )(x2d, w, b.reshape(1, N))


# --------------------------------------------------------------------------
# Scaled dot-product attention, one batch per grid step, all heads folded in.
#   q_ref : (1, L, H, Dh)     kv_ref: (1, L, 2, H, Dh)     o_ref: (1, L, H*Dh)
# Output is written head-concatenated -> lane-dense (L, D) tile per batch.
# --------------------------------------------------------------------------
def _attn_kernel(q_ref, kv_ref, o_ref, *, scale, n_head, d_head):
    q = q_ref[0].astype(jnp.float32) * scale   # pre-scale q (L*H*Dh muls, not L*L*H)
    kv = kv_ref[0].astype(jnp.float32)         # (L, 2, H, Dh): fused K|V projection

    for h in range(n_head):                    # static unroll over heads
        qh = q[:, h, :]                        # (L, Dh)
        kh = kv[:, 0, h, :]                    # (L, Dh)
        vh = kv[:, 1, h, :]                    # (L, Dh)

        # scores without an explicit k.T (contract last dims directly)
        s = lax.dot_general(qh, kh, (((1,), (1,)), ((), ())),
                            preferred_element_type=jnp.float32)    # (L, L)
        m = jnp.max(s, axis=-1, keepdims=True)
        p = jnp.exp(s - m)
        denom = jnp.sum(p, axis=-1, keepdims=True)
        p = p * pl.reciprocal(denom, approx=True)                  # EUP, not VPU divide

        oh = jnp.dot(p, vh, preferred_element_type=jnp.float32)    # (L, Dh)
        # head-concat directly into the lane-dense (L, D) output tile
        o_ref[0, :, h * d_head:(h + 1) * d_head] = oh.astype(o_ref.dtype)


def sdpa(qh, kvh):
    """qh: (B, L, H, Dh), kvh: (B, L, 2, H, Dh) -> (B, L, H*Dh). Non-causal, no mask."""
    B, L, H, Dh = qh.shape
    scale = 1.0 / math.sqrt(Dh)   # matches F.scaled_dot_product_attention default
    return pl.pallas_call(
        functools.partial(_attn_kernel, scale=scale, n_head=H, d_head=Dh),
        out_shape=jax.ShapeDtypeStruct((B, L, H * Dh), qh.dtype),
        grid=(B,),
        in_specs=[
            pl.BlockSpec((1, L, H, Dh), lambda b: (b, 0, 0, 0)),
            pl.BlockSpec((1, L, 2, H, Dh), lambda b: (b, 0, 0, 0, 0)),
        ],
        out_specs=pl.BlockSpec((1, L, H * Dh), lambda b: (b, 0, 0)),
        compiler_params=pltpu.CompilerParams(
            dimension_semantics=("parallel",),
            vmem_limit_bytes=32 * 1024 * 1024,
        ),
    )(qh, kvh)


# --------------------------------------------------------------------------
# Module: parameter init + forward
# --------------------------------------------------------------------------
def init_attention_params(key, d_model):
    bound = 1.0 / math.sqrt(d_model)
    keys = jax.random.split(key, 8)

    def lin(kw, kb):
        # Stored as (in, out) so kernels compute x @ W + b.
        w = jax.random.uniform(kw, (d_model, d_model), jnp.float32, -bound, bound)
        b = jax.random.uniform(kb, (d_model,), jnp.float32, -bound, bound)
        return w, b

    wq, bq = lin(keys[0], keys[1])
    wk, bk = lin(keys[2], keys[3])
    wv, bv = lin(keys[4], keys[5])
    wc, bc = lin(keys[6], keys[7])
    return dict(wq=wq, bq=bq, wk=wk, bk=bk, wv=wv, bv=bv, wc=wc, bc=bc)


def attention_forward(params, q, kv, n_head):
    """q, kv: (B, L, D) -> (B, L, D). Equivalent to Attention.forward(q, kv)."""
    B, L, D = q.shape
    Dh = D // n_head

    # Q projection (tiled/pipelined).
    qp = linear(q.reshape(B * L, D), params["wq"], params["bq"])          # (B*L, D)

    # Fused K|V projection: one HBM pass over kv, wide-N MXU pass.
    wkv = jnp.concatenate([params["wk"], params["wv"]], axis=1)           # (D, 2D)
    bkv = jnp.concatenate([params["bk"], params["bv"]], axis=0)           # (2D,)
    kvp = linear(kv.reshape(B * L, D), wkv, bkv)                          # (B*L, 2D)

    # Pure reshapes only (no HBM transposes); heads are selected inside the kernel.
    qh = qp.reshape(B, L, n_head, Dh)
    kvh = kvp.reshape(B, L, 2, n_head, Dh)

    o = sdpa(qh, kvh)                                                     # (B, L, D)
    out = linear(o.reshape(B * L, D), params["wc"], params["bc"])
    return out.reshape(B, L, D)


# --------------------------------------------------------------------------
# Pure-JAX reference for correctness checking
# --------------------------------------------------------------------------
def attention_reference(params, q, kv, n_head):
    B, L, D = q.shape
    Dh = D // n_head
    qp = q @ params["wq"] + params["bq"]
    kp = kv @ params["wk"] + params["bk"]
    vp = kv @ params["wv"] + params["bv"]

    def split(t):
        return t.reshape(B, L, n_head, Dh).transpose(0, 2, 1, 3)

    qh, kh, vh = split(qp), split(kp), split(vp)
    s = jnp.einsum("bhqd,bhkd->bhqk", qh, kh) / math.sqrt(Dh)
    p = jax.nn.softmax(s, axis=-1)
    oh = jnp.einsum("bhqk,bhkd->bhqd", p, vh)
    o = oh.transpose(0, 2, 1, 3).reshape(B, L, D)
    return o @ params["wc"] + params["bc"]


if __name__ == "__main__":
    B, L, D, H = 2, 8, 32, 4

    key = jax.random.PRNGKey(0)
    kp, kq, kkv = jax.random.split(key, 3)
    params = init_attention_params(kp, D)
    q = jax.random.normal(kq, (B, L, D), jnp.float32)
    kv = jax.random.normal(kkv, (B, L, D), jnp.float32)

    out = attention_forward(params, q, kv, H)
    out = jax.block_until_ready(out)

    ref = attention_reference(params, q, kv, H)
    assert out.shape == (B, L, D)
    # tolerance slightly relaxed because the softmax denominator uses the EUP
    # approximate reciprocal (pl.reciprocal(approx=True)).
    assert jnp.allclose(out, ref, atol=2e-3, rtol=2e-3), "mismatch vs reference"

    print("KERNEL_OK")
</pallas_src>

<mosaic_0001>
module attributes {stable_mosaic.version = 11 : i64} {
  func.func @_linear_kernel(%arg0: i32, %arg1: i32, %arg2: i32, %arg3: memref<16x32xf32, #tpu.memory_space<vmem>>, %arg4: memref<32x32xf32, #tpu.memory_space<vmem>>, %arg5: memref<1x32xf32, #tpu.memory_space<vmem>>, %arg6: memref<16x32xf32, #tpu.memory_space<vmem>>, %arg7: memref<16x32xf32, #tpu.memory_space<vmem>>) attributes {dimension_semantics = [#tpu.dimension_semantics<parallel>, #tpu.dimension_semantics<parallel>, #tpu.dimension_semantics<arbitrary>], iteration_bounds = array<i64: 1, 1, 1>, scalar_prefetch = 0 : i64, scratch_operands = 1 : i64, tpu.core_type = #tpu.core_type<tc>, window_params = [{transform_indices = @transform_0, window_bounds = array<i64: 16, 32>}, {transform_indices = @transform_1, window_bounds = array<i64: 32, 32>}, {transform_indices = @transform_2, window_bounds = array<i64: 1, 32>}, {transform_indices = @transform_3, window_bounds = array<i64: 16, 32>}]} {
    %c0_i32 = arith.constant 0 : i32
    %0 = arith.cmpi eq, %arg2, %c0_i32 : i32
    %1 = arith.extui %0 : i1 to i32
    %c0_i32_0 = arith.constant 0 : i32
    %2 = arith.cmpi ne, %1, %c0_i32_0 : i32
    scf.if %2 {
      %cst_10 = arith.constant 0.000000e+00 : f32
      %12 = vector.broadcast %cst_10 : f32 to vector<16x32xf32>
      %c0_11 = arith.constant 0 : index
      %c0_12 = arith.constant 0 : index
      %13 = vector.load %arg7[%c0_11, %c0_12] : memref<16x32xf32, #tpu.memory_space<vmem>>, vector<16x32xf32>
      tpu.vector_store %arg7[%c0_11, %c0_12], %12 {strides = array<i32>} : memref<16x32xf32, #tpu.memory_space<vmem>>, vector<16x32xf32>,
    } else {
    }
    %c0 = arith.constant 0 : index
    %c0_1 = arith.constant 0 : index
    %3 = vector.load %arg7[%c0, %c0_1] : memref<16x32xf32, #tpu.memory_space<vmem>>, vector<16x32xf32>
    %c0_2 = arith.constant 0 : index
    %c0_3 = arith.constant 0 : index
    %4 = vector.load %arg3[%c0_2, %c0_3] : memref<16x32xf32, #tpu.memory_space<vmem>>, vector<16x32xf32>
    %c0_4 = arith.constant 0 : index
    %c0_5 = arith.constant 0 : index
    %5 = vector.load %arg4[%c0_4, %c0_5] : memref<32x32xf32, #tpu.memory_space<vmem>>, vector<32x32xf32>
    %cst = arith.constant dense<0.000000e+00> : vector<16x32xf32>
    %6 = tpu.matmul %4, %5, %cst {dimension_numbers = #tpu.dot_dimension_numbers<[1], [0], [0], [1], [0, 0, 1, 1], [], []>} : vector<16x32xf32>, vector<32x32xf32>, vector<16x32xf32> -> vector<16x32xf32>
    %7 = arith.addf %3, %6 : vector<16x32xf32>
    %c0_6 = arith.constant 0 : index
    %c0_7 = arith.constant 0 : index
    %8 = vector.load %arg7[%c0_6, %c0_7] : memref<16x32xf32, #tpu.memory_space<vmem>>, vector<16x32xf32>
    tpu.vector_store %arg7[%c0_6, %c0_7], %7 {strides = array<i32>} : memref<16x32xf32, #tpu.memory_space<vmem>>, vector<16x32xf32>,
    %c0_i32_8 = arith.constant 0 : i32
    %9 = arith.cmpi eq, %arg2, %c0_i32_8 : i32
    %10 = arith.extui %9 : i1 to i32
    %c0_i32_9 = arith.constant 0 : i32
    %11 = arith.cmpi ne, %10, %c0_i32_9 : i32
    scf.if %11 {
      %c0_10 = arith.constant 0 : index
      %c0_11 = arith.constant 0 : index
      %12 = vector.load %arg7[%c0_10, %c0_11] : memref<16x32xf32, #tpu.memory_space<vmem>>, vector<16x32xf32>
      %c0_12 = arith.constant 0 : index
      %c0_13 = arith.constant 0 : index
      %13 = vector.load %arg5[%c0_12, %c0_13] : memref<1x32xf32, #tpu.memory_space<vmem>>, vector<1x32xf32>
      %14 = vector.broadcast %13 : vector<1x32xf32> to vector<16x32xf32>
      %15 = arith.addf %12, %14 : vector<16x32xf32>
      %c0_14 = arith.constant 0 : index
      %c0_15 = arith.constant 0 : index
      %16 = vector.load %arg6[%c0_14, %c0_15] : memref<16x32xf32, #tpu.memory_space<vmem>>, vector<16x32xf32>
      tpu.vector_store %arg6[%c0_14, %c0_15], %15 {strides = array<i32>} : memref<16x32xf32, #tpu.memory_space<vmem>>, vector<16x32xf32>,
    } else {
    }
    return
  }
  func.func @transform_0(%arg0: i32, %arg1: i32, %arg2: i32) -> (i32, i32) {
    %c0_i32 = arith.constant 0 : i32
    return %arg0, %arg2 : i32, i32
  }
  func.func @transform_1(%arg0: i32, %arg1: i32, %arg2: i32) -> (i32, i32) {
    %c0_i32 = arith.constant 0 : i32
    return %arg2, %arg1 : i32, i32
  }
  func.func @transform_2(%arg0: i32, %arg1: i32, %arg2: i32) -> (i32, i32) {
    %c0_i32 = arith.constant 0 : i32
    %c0_i32_0 = arith.constant 0 : i32
    return %c0_i32, %arg1 : i32, i32
  }
  func.func @transform_3(%arg0: i32, %arg1: i32, %arg2: i32) -> (i32, i32) {
    %c0_i32 = arith.constant 0 : i32
    return %arg0, %arg1 : i32, i32
  }
}

</mosaic_0001>

<bundles_post_ra>
// kernel: tpu_custom_call.1
= control target key start
LH: loop header
LB: loop body
LE: loop exit
PB: predicated region body
PF: predicated region fallthrough
CT: control target
= control target key end

     0   :  { %8 = vsyncpa [#allocation4], 0  ;;  %s325_s0 = inlined_call_operand.hbm [shape: f32[16,32], index: 0, kind: input, shape index: {}]   ;;  %s326_s1 = inlined_call_operand.hbm [shape: f32[32,32], index: 1, kind: input, shape index: {}]   ;;  %s327_s2 = inlined_call_operand.vmem [shape: f32[1,32], index: 2, kind: input, shape index: {}]   ;;  %s328_s3 = inlined_call_operand.hbm [shape: f32[16,32], index: 3, kind: output, shape index: {}]  }
   0x1   :  { %9 = vsyncpa [#allocation7], 0 }
   0x2   :  { %10 = vsyncpa [#allocation5], 0  ;;  %s270_s12 = smov [#allocation3]  }
   0x3   :  { %s16_s13 = sshll.u32 %s270_s12, 4  ;;  %s17_s13 = int_to_ptr.vmem [resolvable:$true] %s16_s13 }
   0x4   :  { %s212_s14 = scalar_lea.vmem %s17_s13, 256  ;;  %p217_p1 = scmp.lt.s32.totalorder %s17_s13, %s17_s13 }
   0x5   :  { %p213_p0 = scmp.ne.s32.totalorder %s17_s13, %s212_s14  ;;  %p218_p2 = scmp.lt.s32.totalorder %s212_s14, %s212_s14 }
   0x7   :  { %p219_p3 = por %p218_p2, %p217_p1 }
   0x9   :  { %p220_p4 = pnand %p219_p3, %p213_p0 }
   0xb   :  { %223 = shalt.err (!%p220_p4)
}
   0xc   :  { %s271_s15 = smov 128   ;;  %s272_s16 = smov 8  }
   0xd   :  { %22 = dma.hbm_to_vmem [thread:$0]  %s325_s0, 256, %s17_s13, [#allocation4], %s271_s15, %s271_s15, %s272_s16  }
   0xe   :  { %s273_s19 = smov [#allocation6]  }
   0xf   :  { %s28_s20 = sshll.u32 %s273_s19, 4  ;;  %s29_s20 = int_to_ptr.vmem [resolvable:$true] %s28_s20 }
  0x10   :  { %s232_s21 = scalar_lea.vmem %s29_s20, 512  ;;  %p237_p6 = scmp.lt.s32.totalorder %s29_s20, %s29_s20 }
  0x11   :  { %p233_p5 = scmp.ne.s32.totalorder %s29_s20, %s232_s21  ;;  %p238_p7 = scmp.lt.s32.totalorder %s232_s21, %s232_s21 }
  0x13   :  { %p239_p8 = por %p238_p7, %p237_p6 }
  0x15   :  { %p240_p9 = pnand %p239_p8, %p233_p5 }
  0x17   :  { %243 = shalt.err (!%p240_p9)
}
  0x18   :  { %34 = dma.hbm_to_vmem [thread:$0]  %s326_s1, 512, %s29_s20, [#allocation7], %s271_s15, %s271_s15, %s272_s16  }
  0x19   :  { %264 = dma.done.wait [#allocation4], 256  }
  0x1a   :  { %265 = vsyncadd [#allocation4], 4294967040 }
  0x1b   :  { %266 = dma.done.wait [#allocation7], 512  }
  0x1c   :  { %267 = vsyncadd [#allocation7], 4294966784  ;;  %vm47_vm0 = vcmask 261120   ;;  %v274_v0 = vmov 0.0   ;;  %v57_v1 = vld [vmem:[#allocation6 + $0x18] sm:$0xff]  ;;  %v56_v2 = vld [vmem:[#allocation6 + $0x10] sm:$0xff] }
  0x1d   :  { %49 = vst.msk [vmem:[#allocation2 + $0x8] sm:$0xff] %vm47_vm0, %v274_v0  ;;  %48 = vst.msk [vmem:[#allocation2] sm:$0xff] %vm47_vm0, %v274_v0  ;;  %187 = vmatprep.subr.mxu0 %v57_v1  ;;  %v52_v3 = vld [vmem:[#allocation3] sm:$0xff]  ;;  %v55_v4 = vld [vmem:[#allocation6 + $0x8] sm:$0xff]  ;;  %s275_s24 = smov [#allocation8]  }
  0x1e   :  { %188 = vmatpush3.msra.mxu0 %v57_v1  ;;  %195 = vmatprep.mubr.msk.f32.mxu0 %vm47_vm0, %v52_v3  ;;  %v54_v5 = vld [vmem:[#allocation6] sm:$0xff]  ;;  %v53_v6 = vld [vmem:[#allocation3 + $0x8] sm:$0xff]  ;;  %s165_s25 = sshll.u32 %s275_s24, 4  ;;  %s166_s25 = int_to_ptr.vmem [resolvable:$true] %s165_s25 }
  0x1f   :  { %189 = vmatprep.subr.mxu0 %v56_v2  ;;  %v180_v13 = vld [vmem:[%s327_s2] ss:$0 sm:$0xff]  ;;  %s244_s26 = scalar_lea.vmem %s166_s25, 256  ;;  %p249_p11 = scmp.lt.s32.totalorder %s166_s25, %s166_s25 }
  0x20   :  { %190 = vmatpush3.msra.mxu0 %v56_v2  ;;  %p245_p10 = scmp.ne.s32.totalorder %s166_s25, %s244_s26  ;;  %p250_p12 = scmp.lt.s32.totalorder %s244_s26, %s244_s26 }
  0x21   :  { %191 = vmatprep.subr.mxu0 %v55_v4 }
  0x22   :  { %192 = vmatpush3.msra.mxu0 %v55_v4  ;;  %p251_p13 = por %p250_p12, %p249_p11 }
  0x23   :  { %193 = vmatprep.subr.mxu0 %v54_v5 }
  0x24   :  { %194 = vmatpush3.msra.mxu0 %v54_v5  ;;  %v51_v7 = vld [vmem:[#allocation2 + $0x8] sm:$0xff]  ;;  %v50_v9 = vld [vmem:[#allocation2] sm:$0xff]  ;;  %p252_p0 = pnand %p251_p13, %p245_p10 }
  0x25   :  { %196 = vmatmul.mubr.msk.f32.vlgmr.msra.gmra.mxu0 %vm47_vm0, %v53_v6 }
  0xe5   :  { %v197_v8 = vpop.f32.mrf.mxu0 }
  0xe6   :  { %v141_v10 = vadd.f32 %v197_v8, %v51_v7 }
  0xe7   :  { %v131_v11 = vpop.f32.mrf.mxu0 }
  0xe8   :  { %143 = vst.msk [vmem:[#allocation2 + $0x8] sm:$0xff] %vm47_vm0, %v141_v10  ;;  %v140_v12 = vadd.f32 %v131_v11, %v50_v9 }
  0xea   :  { %142 = vst.msk [vmem:[#allocation2] sm:$0xff] %vm47_vm0, %v140_v12 }
  0xef   :  { %v148_v14 = vld [vmem:[#allocation2 + $0x8] sm:$0xff] }
  0xf0   :  { %v157_v15 = vadd.f32 %v180_v13, %v148_v14 }
  0xf1   :  { %v147_v16 = vld [vmem:[#allocation2] sm:$0xff] }
  0xf2   :  { %v156_v17 = vadd.f32 %v180_v13, %v147_v16  ;;  %159 = vst.msk [vmem:[#allocation8 + $0x8] sm:$0xff] %vm47_vm0, %v157_v15 }
  0xf4   :  { %158 = vst.msk [vmem:[#allocation8] sm:$0xff] %vm47_vm0, %v156_v17 }
  0xf5   :  { %255 = shalt.err (!%p252_p0)
}
  0xf6   :  { %171 = dma.vmem_to_hbm [thread:$0]  %s166_s25, 256, %s328_s3, [#allocation5], %s271_s15, %s271_s15, %s272_s16  }
  0xf7   :  { %268 = dma.done.wait [#allocation5], 256  }
  0xf8   :  { %269 = vsyncadd [#allocation5], 4294967040 }
  0xf9   :  { %175 = vsyncpa [#allocation4], 1 }
  0xfa   :  { %176 = vsyncpa [#allocation7], 1 }
  0xfb   :  { %177 = vsyncpa [#allocation5], 1 }

</bundles_post_ra>
